<compile_context>
chip_gen: v6e
topology: v6e:2x2x1
jax: 0.10.0
libtpu: 0.0.40
codegen_flags: <defaults>
</compile_context>

<pallas_src>
import functools

import jax
import jax.numpy as jnp
from jax import lax
from jax.experimental import pallas as pl
from jax.experimental.pallas import tpu as pltpu


def _tv_partial_kernel(x_ref, hcoord_ref, wcoord_ref, hpart_ref, wpart_ref, *,
                       width, total_rows, block_rows, ragged):
    """Per-block partial TV sums.

    x_ref:      (rows, HWp)  block of flattened image planes
    hcoord_ref: (1, HWp)     row index h of each lane (f32), -1 in padding
    wcoord_ref: (1, HWp)     col index w of each lane (f32), -1 in padding
    hpart_ref:  (1, 1, 128)  this block's sum of vertical   (along-H) diffs^2
    wpart_ref:  (1, 1, 128)  this block's sum of horizontal (along-W) diffs^2
    """
    x = x_ref[...]
    if x.dtype != jnp.float32:
        # TODO(synk): keep bf16-native subtraction on v6e/v7x (halves vreg use).
        x = x.astype(jnp.float32)

    if ragged:
        # Last block extends past N: zero the out-of-bounds rows (their VMEM
        # contents are undefined).  Static no-op when N % rows == 0.
        n_valid = total_rows - pl.program_id(0) * block_rows
        row_id = lax.broadcasted_iota(jnp.int32, (block_rows, 1), 0)
        x = jnp.where(row_id < n_valid, x, 0.0)

    # Neighbour values via XLU lane rotation (full-shape, no misaligned slices).
    x_v = pltpu.roll(x, shift=width, axis=1)   # candidate vertical neighbour
    x_h = pltpu.roll(x, shift=1, axis=1)       # candidate horizontal neighbour
    dv = x - x_v
    dh = x - x_h

    # Mask-hoist: collapse the row (sublane) axis first; the boundary masks are
    # per-lane only, so applying them after the row-sum is mathematically
    # identical and removes one multiply per element per direction.
    col_v = jnp.sum(dv * dv, axis=0, keepdims=True)   # (1, HWp)
    col_h = jnp.sum(dh * dh, axis=0, keepdims=True)   # (1, HWp)

    # Direction-robust masks: roll the coordinate rows with the *same* op so
    # validity matches whatever wrap/direction convention the hardware uses.
    h_id = hcoord_ref[...]
    w_id = wcoord_ref[...]
    hv = pltpu.roll(h_id, shift=width, axis=1)
    wv = pltpu.roll(w_id, shift=width, axis=1)
    hh = pltpu.roll(h_id, shift=1, axis=1)
    wh = pltpu.roll(w_id, shift=1, axis=1)
    vert_mask = jnp.logical_and(jnp.abs(h_id - hv) == 1.0, w_id == wv)
    horz_mask = jnp.logical_and(h_id == hh, jnp.abs(w_id - wh) == 1.0)

    h_sum = jnp.sum(col_v * vert_mask.astype(jnp.float32))
    w_sum = jnp.sum(col_h * horz_mask.astype(jnp.float32))
    hpart_ref[...] = jnp.full(hpart_ref.shape, h_sum, jnp.float32)
    wpart_ref[...] = jnp.full(wpart_ref.shape, w_sum, jnp.float32)


def _default_block_bytes():
    # v7x (3.2 TB/s per TC): a 1 MiB block DMAs in ~0.3 us, same order as the
    # ~0.35 us per-grid-step overhead, so use 4 MiB there.  v5e/v6e keep 1 MiB
    # (measured ~85% of HBM roofline at that size).
    try:
        info = pltpu.get_tpu_info()
        if info.vmem_capacity_bytes <= (64 << 20):   # v7x: 64 MiB VMEM per TC
            return 4 << 20
    except Exception:
        pass
    return 1 << 20


@functools.partial(jax.jit, static_argnames=("target_block_bytes",))
def tv_loss(x, tv_loss_weight=1.0, *, target_block_bytes=None):
    """TV loss matching PyTorch TVLoss.forward semantics. x: (B, C, H, W)."""
    B, C, H, W = x.shape
    N = B * C
    HW = H * W

    if target_block_bytes is None:
        target_block_bytes = _default_block_bytes()

    # Lane-dense flattening: one image plane per row.  Fast path (no pad, no
    # extra HBM traffic) when HW is already a multiple of 128.
    if HW % 128 == 0:
        HWp = HW
        x_flat = x.reshape(N, HW)
    else:
        # TODO(synk): replace this pad (an extra full HBM read+write of x) with
        # a manual DMA of unpadded rows into a zero-initialised VMEM scratch.
        HWp = pl.cdiv(HW, 128) * 128
        x_flat = jnp.pad(x.reshape(N, HW), ((0, 0), (0, HWp - HW)))

    # H == 2 with no spatial padding: the roll-by-W wraparound pairs each
    # vertical neighbour twice (once from each row) -> halve h_tv.  With
    # padding the wrapped partner always lands in padding / another column.
    h_tv_scale = 0.5 if (H == 2 and HWp == HW) else 1.0

    # Coordinate rows used by the in-kernel boundary masks (-1 marks padding).
    cols = jnp.arange(HWp, dtype=jnp.int32)
    in_img = cols < HW
    h_coord = jnp.where(in_img, cols // W, -1).astype(jnp.float32).reshape(1, HWp)
    w_coord = jnp.where(in_img, cols % W, -1).astype(jnp.float32).reshape(1, HWp)

    # Block sizing: second-minor dim must be a multiple of 8 or the full N.
    itemsize = jnp.dtype(x.dtype).itemsize
    target_rows = max(8, target_block_bytes // (HWp * itemsize))
    target_rows -= target_rows % 8
    if N <= 8:
        rows = N                                   # full leading dim: legal
    else:
        # Cap so there are >= 2 blocks (keeps both v7x TensorCores busy).
        rows = min(target_rows, max(8, (N // 2) // 8 * 8))
    num_blocks = pl.cdiv(N, rows)
    ragged = (N % rows) != 0                       # tail handled in-kernel
    block_bytes = rows * HWp * itemsize

    # Double-buffered input block + coord rows; only set an explicit scoped
    # VMEM limit when the footprint approaches v5e's 16 MiB default.
    est_vmem = 2 * block_bytes + 4 * HWp * 4 + (1 << 20)
    vmem_limit = min(est_vmem + (4 << 20), 64 << 20) if est_vmem > (12 << 20) else None
    # TODO(synk): for planes where a single (8, HWp) block exceeds VMEM
    # (e.g. 4K-class images), add a second grid axis over HWp with a W-lane halo.

    kernel = functools.partial(
        _tv_partial_kernel, width=W, total_rows=N, block_rows=rows, ragged=ragged)

    h_part, w_part = pl.pallas_call(
        kernel,
        out_shape=(
            jax.ShapeDtypeStruct((num_blocks, 1, 128), jnp.float32),
            jax.ShapeDtypeStruct((num_blocks, 1, 128), jnp.float32),
        ),
        grid_spec=pltpu.PrefetchScalarGridSpec(
            num_scalar_prefetch=0,
            grid=(num_blocks,),
            in_specs=[
                pl.BlockSpec((rows, HWp), lambda i: (i, 0)),
                pl.BlockSpec((1, HWp), lambda i: (0, 0)),
                pl.BlockSpec((1, HWp), lambda i: (0, 0)),
            ],
            out_specs=(
                pl.BlockSpec((1, 1, 128), lambda i: (i, 0, 0)),
                pl.BlockSpec((1, 1, 128), lambda i: (i, 0, 0)),
            ),
        ),
        compiler_params=pltpu.CompilerParams(
            # Independent per-block partials -> grid shards across TensorCores
            # on v7x megacore; single-TC chips are unaffected.
            dimension_semantics=("parallel",),
            vmem_limit_bytes=vmem_limit,
        ),
    )(x_flat, h_coord, w_coord)

    # Tiny final combine (fused by jit).
    h_tv = jnp.sum(h_part[:, 0, 0]) * h_tv_scale
    w_tv = jnp.sum(w_part[:, 0, 0])
    # Note: H == 1 (or W == 1) makes count_h (count_w) zero -> inf/nan, which
    # matches the PyTorch module's behavior.
    count_h = C * (H - 1) * W
    count_w = C * H * (W - 1)
    return tv_loss_weight * 2.0 * (h_tv / count_h + w_tv / count_w) / B


if __name__ == "__main__":
    key = jax.random.PRNGKey(0)
    B, C, H, W = 2, 4, 16, 16
    x = jax.random.normal(key, (B, C, H, W), dtype=jnp.float32)

    out = tv_loss(x, tv_loss_weight=1.0)
    out = jax.block_until_ready(out)

    # Pure-JAX reference (same math as the PyTorch module).
    h_tv = jnp.sum((x[:, :, 1:, :] - x[:, :, :-1, :]) ** 2)
    w_tv = jnp.sum((x[:, :, :, 1:] - x[:, :, :, :-1]) ** 2)
    ref = 2.0 * (h_tv / (C * (H - 1) * W) + w_tv / (C * H * (W - 1))) / B
    assert jnp.allclose(out, ref, rtol=1e-5, atol=1e-5), (out, ref)

    print("KERNEL_OK")
</pallas_src>

<mosaic_0001>
module attributes {stable_mosaic.version = 11 : i64} {
  func.func @_tv_partial_kernel(%arg0: i32, %arg1: memref<8x256xf32, #tpu.memory_space<vmem>>, %arg2: memref<1x256xf32, #tpu.memory_space<vmem>>, %arg3: memref<1x256xf32, #tpu.memory_space<vmem>>, %arg4: memref<1x1x128xf32, #tpu.memory_space<vmem>>, %arg5: memref<1x1x128xf32, #tpu.memory_space<vmem>>) attributes {dimension_semantics = [#tpu.dimension_semantics<parallel>], iteration_bounds = array<i64: 1>, scalar_prefetch = 0 : i64, scratch_operands = 0 : i64, tpu.core_type = #tpu.core_type<tc>, window_params = [{transform_indices = @transform_0, window_bounds = array<i64: 8, 256>}, {pipeline_mode = #tpu.pipeline_mode<synchronous>, transform_indices = @transform_1, window_bounds = array<i64: 1, 256>}, {pipeline_mode = #tpu.pipeline_mode<synchronous>, transform_indices = @transform_2, window_bounds = array<i64: 1, 256>}, {transform_indices = @transform_3, window_bounds = array<i64: 1, 1, 128>}, {transform_indices = @transform_4, window_bounds = array<i64: 1, 1, 128>}]} {
    %c0 = arith.constant 0 : index
    %c0_0 = arith.constant 0 : index
    %0 = vector.load %arg1[%c0, %c0_0] : memref<8x256xf32, #tpu.memory_space<vmem>>, vector<8x256xf32>
    %c16_i32 = arith.constant 16 : i32
    %1 = tpu.dynamic_rotate %0 by %c16_i32 dim 1 : vector<8x256xf32>, i32 -> vector<8x256xf32>
    %c1_i32 = arith.constant 1 : i32
    %2 = tpu.dynamic_rotate %0 by %c1_i32 dim 1 : vector<8x256xf32>, i32 -> vector<8x256xf32>
    %3 = arith.subf %0, %1 : vector<8x256xf32>
    %4 = arith.subf %0, %2 : vector<8x256xf32>
    %5 = arith.mulf %3, %3 : vector<8x256xf32>
    %cst = arith.constant dense<0.000000e+00> : vector<256xf32>
    %6 = vector.multi_reduction <add>, %5, %cst [0] : vector<8x256xf32> to vector<256xf32>
    %7 = vector.shape_cast %6 : vector<256xf32> to vector<1x256xf32>
    %8 = arith.mulf %4, %4 : vector<8x256xf32>
    %cst_1 = arith.constant dense<0.000000e+00> : vector<256xf32>
    %9 = vector.multi_reduction <add>, %8, %cst_1 [0] : vector<8x256xf32> to vector<256xf32>
    %10 = vector.shape_cast %9 : vector<256xf32> to vector<1x256xf32>
    %c0_2 = arith.constant 0 : index
    %c0_3 = arith.constant 0 : index
    %11 = vector.load %arg2[%c0_2, %c0_3] : memref<1x256xf32, #tpu.memory_space<vmem>>, vector<1x256xf32>
    %c0_4 = arith.constant 0 : index
    %c0_5 = arith.constant 0 : index
    %12 = vector.load %arg3[%c0_4, %c0_5] : memref<1x256xf32, #tpu.memory_space<vmem>>, vector<1x256xf32>
    %c16_i32_6 = arith.constant 16 : i32
    %13 = tpu.dynamic_rotate %11 by %c16_i32_6 dim 1 : vector<1x256xf32>, i32 -> vector<1x256xf32>
    %c16_i32_7 = arith.constant 16 : i32
    %14 = tpu.dynamic_rotate %12 by %c16_i32_7 dim 1 : vector<1x256xf32>, i32 -> vector<1x256xf32>
    %c1_i32_8 = arith.constant 1 : i32
    %15 = tpu.dynamic_rotate %11 by %c1_i32_8 dim 1 : vector<1x256xf32>, i32 -> vector<1x256xf32>
    %c1_i32_9 = arith.constant 1 : i32
    %16 = tpu.dynamic_rotate %12 by %c1_i32_9 dim 1 : vector<1x256xf32>, i32 -> vector<1x256xf32>
    %17 = arith.subf %11, %13 : vector<1x256xf32>
    %18 = math.absf %17 : vector<1x256xf32>
    %cst_10 = arith.constant 1.000000e+00 : f32
    %19 = vector.broadcast %cst_10 : f32 to vector<1x256xf32>
    %20 = arith.cmpf oeq, %18, %19 : vector<1x256xf32>
    %21 = arith.cmpf oeq, %12, %14 : vector<1x256xf32>
    %22 = arith.andi %20, %21 : vector<1x256xi1>
    %23 = arith.cmpf oeq, %11, %15 : vector<1x256xf32>
    %24 = arith.subf %12, %16 : vector<1x256xf32>
    %25 = math.absf %24 : vector<1x256xf32>
    %cst_11 = arith.constant 1.000000e+00 : f32
    %26 = vector.broadcast %cst_11 : f32 to vector<1x256xf32>
    %27 = arith.cmpf oeq, %25, %26 : vector<1x256xf32>
    %28 = arith.andi %23, %27 : vector<1x256xi1>
    %29 = arith.extui %22 : vector<1x256xi1> to vector<1x256xi32>
    %30 = arith.sitofp %29 : vector<1x256xi32> to vector<1x256xf32>
    %31 = arith.mulf %7, %30 : vector<1x256xf32>
    %32 = vector.shape_cast %31 : vector<1x256xf32> to vector<1x1x256xf32>
    %cst_12 = arith.constant dense<0.000000e+00> : vector<1xf32>
    %33 = vector.multi_reduction <add>, %32, %cst_12 [1, 2] : vector<1x1x256xf32> to vector<1xf32>
    %34 = vector.shape_cast %33 : vector<1xf32> to vector<1x1x1xf32>
    %35 = vector.extract %34[0, 0, 0] : f32 from vector<1x1x1xf32>
    %36 = arith.extui %28 : vector<1x256xi1> to vector<1x256xi32>
    %37 = arith.sitofp %36 : vector<1x256xi32> to vector<1x256xf32>
    %38 = arith.mulf %10, %37 : vector<1x256xf32>
    %39 = vector.shape_cast %38 : vector<1x256xf32> to vector<1x1x256xf32>
    %cst_13 = arith.constant dense<0.000000e+00> : vector<1xf32>
    %40 = vector.multi_reduction <add>, %39, %cst_13 [1, 2] : vector<1x1x256xf32> to vector<1xf32>
    %41 = vector.shape_cast %40 : vector<1xf32> to vector<1x1x1xf32>
    %42 = vector.extract %41[0, 0, 0] : f32 from vector<1x1x1xf32>
    %43 = vector.broadcast %35 : f32 to vector<1x1x128xf32>
    %c0_14 = arith.constant 0 : index
    %c0_15 = arith.constant 0 : index
    %c0_16 = arith.constant 0 : index
    %44 = vector.load %arg4[%c0_14, %c0_15, %c0_16] : memref<1x1x128xf32, #tpu.memory_space<vmem>>, vector<1x1x128xf32>
    tpu.vector_store %arg4[%c0_14, %c0_15, %c0_16], %43 {strides = array<i32>} : memref<1x1x128xf32, #tpu.memory_space<vmem>>, vector<1x1x128xf32>,
    %45 = vector.broadcast %42 : f32 to vector<1x1x128xf32>
    %c0_17 = arith.constant 0 : index
    %c0_18 = arith.constant 0 : index
    %c0_19 = arith.constant 0 : index
    %46 = vector.load %arg5[%c0_17, %c0_18, %c0_19] : memref<1x1x128xf32, #tpu.memory_space<vmem>>, vector<1x1x128xf32>
    tpu.vector_store %arg5[%c0_17, %c0_18, %c0_19], %45 {strides = array<i32>} : memref<1x1x128xf32, #tpu.memory_space<vmem>>, vector<1x1x128xf32>,
    return
  }
  func.func @transform_0(%arg0: i32) -> (i32, i32) {
    %c0_i32 = arith.constant 0 : i32
    %c0_i32_0 = arith.constant 0 : i32
    return %arg0, %c0_i32 : i32, i32
  }
  func.func @transform_1(%arg0: i32) -> (i32, i32) {
    %c0_i32 = arith.constant 0 : i32
    %c0_i32_0 = arith.constant 0 : i32
    %c0_i32_1 = arith.constant 0 : i32
    return %c0_i32, %c0_i32_0 : i32, i32
  }
  func.func @transform_2(%arg0: i32) -> (i32, i32) {
    %c0_i32 = arith.constant 0 : i32
    %c0_i32_0 = arith.constant 0 : i32
    %c0_i32_1 = arith.constant 0 : i32
    return %c0_i32, %c0_i32_0 : i32, i32
  }
  func.func @transform_3(%arg0: i32) -> (i32, i32, i32) {
    %c0_i32 = arith.constant 0 : i32
    %c0_i32_0 = arith.constant 0 : i32
    %c0_i32_1 = arith.constant 0 : i32
    return %arg0, %c0_i32, %c0_i32_0 : i32, i32, i32
  }
  func.func @transform_4(%arg0: i32) -> (i32, i32, i32) {
    %c0_i32 = arith.constant 0 : i32
    %c0_i32_0 = arith.constant 0 : i32
    %c0_i32_1 = arith.constant 0 : i32
    return %arg0, %c0_i32, %c0_i32_0 : i32, i32, i32
  }
}

</mosaic_0001>

<bundles_post_ra>
// kernel: tv_loss.1
= control target key start
LH: loop header
LB: loop body
LE: loop exit
PB: predicated region body
PF: predicated region fallthrough
CT: control target
= control target key end

     0   :  { %v22_v0 = vlaneseq  ;;  %s273_s17 = smov 1   ;;  %s274_s18 = smov 16   ;;  %v275_v13 = vmov 1966171168   ;;  %vm211_vm6 = vcmask 1040384   ;;  %s376_s0 = inlined_call_operand.vmem [shape: f32[8,256], index: 0, kind: input, shape index: {}]   ;;  %s377_s1 = inlined_call_operand.vmem [shape: f32[1,256], index: 1, kind: input, shape index: {}]   ;;  %s378_s2 = inlined_call_operand.vmem [shape: f32[1,256], index: 2, kind: input, shape index: {}]   ;;  %s379_s3 = inlined_call_operand.vmem [shape: f32[1,1,128], index: 3, kind: output, shape index: {0}]   ;;  %s380_s4 = inlined_call_operand.vmem [shape: f32[1,1,128], index: 4, kind: output, shape index: {1}]  }
   0x1   :  { %v16_v1 = vld [vmem:[%s376_s0] sm:$0xff]  ;;  %v17_v3 = vld [vmem:[%s376_s0 + $0x8] sm:$0xff]  ;;  %v118_v14 = vunpack.c.l.s4 %v275_v13 }
   0x2   :  { %27 = vrot.lane.b32.xlu1 %v16_v1, %s273_s17  ;;  %18 = vrot.lane.b32.xlu0 %v16_v1, %s274_s18  ;;  %v70_v2 = vshrl.u32 %v22_v0, 7  ;;  %v311_v4 = vld [vmem:[%s377_s1] sm:$0x3]  ;;  %v330_v12 = vand.u32 127, %v22_v0 }
   0x3   :  { %v324_v9 = vld [vmem:[%s378_s2] sm:$0x3]  ;;  %v119_v17 = vunpack.c.0.s8 %v118_v14 }
   0x4   :  { %v313_v5 = vsub.s32 1, %v70_v2  ;;  %v315_v6 = vsub.s32 0, %v70_v2  ;;  %vm31_vm0 = vcmp.lt.s32.totalorder %v330_v12, 1  ;;  %vm24_vm1 = vcmp.lt.s32.totalorder %v330_v12, 16 }
   0x5   :  { %v122_v34 = vsub.s32 %v119_v17, %v70_v2 }
   0x6   :  { %29 = vrot.lane.b32.xlu1 %v17_v3, %s273_s17  ;;  %20 = vrot.lane.b32.xlu0 %v17_v3, %s274_s18  ;;  %v76_v7 = vrot.slane %v311_v4, %v313_v5  ;;  %v72_v8 = vrot.slane %v311_v4, %v315_v6  ;;  %v93_v10 = vrot.slane %v324_v9, %v313_v5 }
   0x7   :  { %v89_v11 = vrot.slane %v324_v9, %v315_v6 }
   0xa   :  { %81 = vrot.lane.b32.xlu1 %v76_v7, %s274_s18  ;;  %79 = vrot.lane.b32.xlu0 %v72_v8, %s274_s18 }
   0xe   :  { %110 = vrot.lane.b32.xlu1 %v93_v10, %s273_s17  ;;  %108 = vrot.lane.b32.xlu0 %v89_v11, %s273_s17 }
  0x12   :  { %98 = vrot.lane.b32.xlu1 %v93_v10, %s274_s18  ;;  %96 = vrot.lane.b32.xlu0 %v89_v11, %s274_s18 }
  0x16   :  { %104 = vrot.lane.b32.xlu1 %v76_v7, %s273_s17  ;;  %102 = vrot.lane.b32.xlu0 %v72_v8, %s273_s17 }
  0x74   :  { %v28_v15 = vpop.permute.xlu1 %27  ;;  %v19_v16 = vpop.permute.xlu0 %18 }
  0x78   :  { %v30_v18 = vpop.permute.xlu1 %29  ;;  %v21_v19 = vpop.permute.xlu0 %20 }
  0x79   :  { %v32_v20 = vsel %vm31_vm0, %v28_v15, %v30_v18  ;;  %v33_v21 = vsel %vm31_vm0, %v30_v18, %v28_v15  ;;  %v25_v22 = vsel %vm24_vm1, %v19_v16, %v21_v19  ;;  %v26_v23 = vsel %vm24_vm1, %v21_v19, %v19_v16 }
  0x7a   :  { %v36_v24 = vsub.f32 %v16_v1, %v33_v21  ;;  %v37_v25 = vsub.f32 %v17_v3, %v32_v20  ;;  %v34_v26 = vsub.f32 %v16_v1, %v26_v23  ;;  %v35_v27 = vsub.f32 %v17_v3, %v25_v22 }
  0x7c   :  { %v52_v28 = vmul.f32 %v36_v24, %v36_v24  ;;  %v53_v29 = vmul.f32 %v37_v25, %v37_v25  ;;  %v38_v30 = vmul.f32 %v34_v26, %v34_v26  ;;  %v39_v31 = vmul.f32 %v35_v27, %v35_v27  ;;  %v82_v32 = vpop.permute.xlu1 %81  ;;  %v80_v33 = vpop.permute.xlu0 %79 }
  0x7d   :  { %v83_v35 = vsel %vm24_vm1, %v80_v33, %v82_v32  ;;  %v84_v36 = vsel %vm24_vm1, %v82_v32, %v80_v33  ;;  %v276_v24 = vmov 0.0  }
  0x7e   :  { %v54_v37 = vrot.slane %v52_v28, 4  ;;  %v60_v38 = vrot.slane %v53_v29, 4  ;;  %v40_v39 = vrot.slane %v38_v30, 4  ;;  %v46_v40 = vrot.slane %v39_v31, 4 }
  0x7f   :  { %v116_v41 = vcombine.low %v84_v36, %v83_v35 }
  0x80   :  { %v41_v42 = vadd.f32 %v40_v39, %v38_v30  ;;  %v47_v43 = vadd.f32 %v46_v40, %v39_v31  ;;  %v111_v44 = vpop.permute.xlu1 %110  ;;  %v109_v45 = vpop.permute.xlu0 %108  ;;  %v55_v49 = vadd.f32 %v54_v37, %v52_v28  ;;  %v61_v50 = vadd.f32 %v60_v38, %v53_v29 }
  0x81   :  { %v123_v46 = vrot.slane %v116_v41, %v122_v34  ;;  %v112_v47 = vsel %vm31_vm0, %v109_v45, %v111_v44  ;;  %v113_v48 = vsel %vm31_vm0, %v111_v44, %v109_v45 }
  0x82   :  { %v42_v51 = vrot.slane %v41_v42, 2  ;;  %v48_v52 = vrot.slane %v47_v43, 2  ;;  %v176_v54 = vcombine.low %v113_v48, %v112_v47  ;;  %v56_v61 = vrot.slane %v55_v49, 2 }
  0x83   :  { %v130_v53 = vrot.slane %v123_v46, %v122_v34  ;;  %v62_v62 = vrot.slane %v61_v50, 2 }
  0x84   :  { %v99_v55 = vpop.permute.xlu1 %98  ;;  %v97_v56 = vpop.permute.xlu0 %96  ;;  %v183_v58 = vrot.slane %v176_v54, %v122_v34  ;;  %v43_v0 = vadd.f32 %v42_v51, %v41_v42  ;;  %v49_v1 = vadd.f32 %v48_v52, %v47_v43  ;;  %v57_v15 = vadd.f32 %v56_v61, %v55_v49 }
  0x85   :  { %v132_v57 = vsub.f32 %v311_v4, %v130_v53  ;;  %v100_v59 = vsel %vm24_vm1, %v97_v56, %v99_v55  ;;  %v101_v60 = vsel %vm24_vm1, %v99_v55, %v97_v56  ;;  %v63_v16 = vadd.f32 %v62_v62, %v61_v50 }
  0x86   :  { %v137_v63 = vcombine.low %v101_v60, %v100_v59  ;;  %v190_v2 = vrot.slane %v183_v58, %v122_v34  ;;  %v44_v19 = vrot.slane %v43_v0, 1  ;;  %v50_v20 = vrot.slane %v49_v1, 1 }
  0x87   :  { %v133_v3 = vand.u32 2147483647, %v132_v57  ;;  %v58_v26 = vrot.slane %v57_v15, 1  ;;  %v64_v27 = vrot.slane %v63_v16, 1 }
  0x88   :  { %v144_v7 = vrot.slane %v137_v63, %v122_v34  ;;  %v105_v8 = vpop.permute.xlu1 %104  ;;  %v103_v10 = vpop.permute.xlu0 %102  ;;  %v192_v11 = vsub.f32 %v324_v9, %v190_v2  ;;  %v45_v28 = vadd.f32 %v44_v19, %v43_v0  ;;  %v51_v12 = vadd.f32 %v50_v20, %v49_v1 }
  0x89   :  { %v106_v13 = vsel %vm31_vm0, %v103_v10, %v105_v8  ;;  %v107_v14 = vsel %vm31_vm0, %v105_v8, %v103_v10  ;;  %vm134_vm3 = vcmp.eq.f32.partialorder %v133_v3, 1.0  ;;  %v59_v32 = vadd.f32 %v58_v26, %v57_v15 }
  0x8a   :  { %v151_v17 = vrot.slane %v144_v7, %v122_v34  ;;  %v157_v18 = vcombine.low %v107_v14, %v106_v13  ;;  %v193_v21 = vand.u32 2147483647, %v192_v11  ;;  %v65_v33 = vadd.f32 %v64_v27, %v63_v16 }
  0x8c   :  { %vm153_vm2 = vcmp.eq.f32.partialorder %v324_v9, %v151_v17  ;;  %v164_v22 = vrot.slane %v157_v18, %v122_v34  ;;  %vm194_vm7 = vcmp.eq.f32.partialorder %v193_v21, 1.0 }
  0x8d   :  { %vm154_vm4 = vmand %vm134_vm3, %vm153_vm2 }
  0x8e   :  { %v171_v23 = vrot.slane %v164_v22, %v122_v34  ;;  %v263_v25 = vsel %vm154_vm4, 1.0, %v276_v24 }
  0x8f   :  { %v202_v29 = vrot.slane %v263_v25, %v315_v6  ;;  %v206_v30 = vrot.slane %v263_v25, %v313_v5 }
  0x90   :  { %vm173_vm5 = vcmp.eq.f32.partialorder %v311_v4, %v171_v23 }
  0x91   :  { %v209_v31 = vmul.f32 %v202_v29, %v45_v28  ;;  %v210_v9 = vmul.f32 %v206_v30, %v51_v12  ;;  %vm195_vm8 = vmand %vm173_vm5, %vm194_vm7 }
  0x92   :  { %v264_v34 = vsel %vm195_vm8, 1.0, %v276_v24 }
  0x93   :  { %v212_v35 = vsel %vm211_vm6, %v209_v31, 0.0  ;;  %v213_v36 = vsel %vm211_vm6, %v210_v9, 0.0  ;;  %v230_v37 = vrot.slane %v264_v34, %v315_v6  ;;  %v234_v38 = vrot.slane %v264_v34, %v313_v5 }
  0x94   :  { %v214_v39 = vadd.f32 %v213_v36, %v212_v35 }
  0x95   :  { %v237_v40 = vmul.f32 %v230_v37, %v59_v32  ;;  %v238_v41 = vmul.f32 %v234_v38, %v65_v33 }
  0x96   :  { %215 = vadd.xlane.f32.xlu0 %v214_v39 }
  0x97   :  { %v239_v4 = vsel %vm211_vm6, %v237_v40, 0.0  ;;  %v240_v42 = vsel %vm211_vm6, %v238_v41, 0.0 }
  0x98   :  { %v241_v43 = vadd.f32 %v240_v42, %v239_v4 }
  0x9a   :  { %242 = vadd.xlane.f32.xlu1 %v241_v43 }
 0x11f   :  { %v216_v44 = vpop.xlane.xlu0 %215 }
 0x120   :  { %v217_v45 = vrot.slane %v216_v44, 4 }
 0x122   :  { %v218_v46 = vadd.f32 %v217_v45, %v216_v44 }
 0x123   :  { %v243_v47 = vpop.xlane.xlu1 %242 }
 0x124   :  { %v219_v48 = vrot.slane %v218_v46, 2  ;;  %v244_v49 = vrot.slane %v243_v47, 4 }
 0x126   :  { %v245_v50 = vadd.f32 %v244_v49, %v243_v47  ;;  %v220_v6 = vadd.f32 %v219_v48, %v218_v46 }
 0x128   :  { %v246_v51 = vrot.slane %v245_v50, 2  ;;  %v221_v5 = vrot.slane %v220_v6, 1 }
 0x12a   :  { %v247_v52 = vadd.f32 %v246_v51, %v245_v50  ;;  %v222_v53 = vadd.f32 %v221_v5, %v220_v6 }
 0x12c   :  { %265 = vpush %v222_v53  ;;  %v248_v54 = vrot.slane %v247_v52, 1 }
 0x12e   :  { %v249_v55 = vadd.f32 %v248_v54, %v247_v52 }
 0x130   :  { %267 = vpush %v249_v55 }
 0x15d   :  { %s266_s0 = spop %265 }
 0x15e   :  { %v251_v56 = vstv %s266_s0 }
 0x15f   :  { %252 = vst [vmem:[%s379_s3] sm:$0x1] %v251_v56 }
 0x161   :  { %s268_s25 = spop %267 }
 0x162   :  { %v253_v57 = vstv %s268_s25 }
 0x163   :  { %254 = vst [vmem:[%s380_s4] sm:$0x1] %v253_v57 }

</bundles_post_ra>
